<compile_context>
chip_gen: v7x
topology: tpu7x:2x2x1
jax: 0.10.0
libtpu: 0.0.40
codegen_flags: <defaults>
</compile_context>

<pallas_src>
import functools

import jax
import jax.numpy as jnp
from jax import lax
from jax.experimental import pallas as pl
from jax.experimental.pallas import tpu as pltpu


def _round_up(x, m):
    return ((x + m - 1) // m) * m


# ----------------------------------------------------------------------------
# Pallas kernel: in-kernel feature-block build + fused MLP.
#   x   = place(x_num) + one_hot(x_cat + offsets)            (TB, K_PAD=128)
#   h1  = relu(x  @ W1f + b1)                                 (TB, 128)
#   h2  = relu(h1 @ W2p + b2)                                 (TB, 128)
#   out = sum(h2 * w3_row, -1) + b3                           (TB, 1)
# ----------------------------------------------------------------------------
def _fused_kernel(x_num_ref, x_cat_ref, w1_ref, b1_ref, w2_ref, b2_ref,
                  w3_ref, b3_ref, out_ref, *, k_pad):
    tb, num = x_num_ref.shape
    ncat = x_cat_ref.shape[1]
    mm_dtype = w1_ref.dtype

    # Lane-dense feature block built on the VPU: column-iota selects scatter the
    # numeric columns into columns [0, num); categorical indices (offsets
    # pre-added by the wrapper) add their one-hot at disjoint columns.
    col = lax.broadcasted_iota(jnp.int32, (tb, k_pad), 1)

    x_num = x_num_ref[...]                                   # (TB, num) f32
    x = jnp.where(col == 0, x_num[:, 0:1], 0.0)
    for j in range(1, num):
        x = x + jnp.where(col == j, x_num[:, j:j + 1], 0.0)

    x_cat = x_cat_ref[...]                                   # (TB, ncat) i32
    for i in range(ncat):
        x = x + (col == x_cat[:, i:i + 1]).astype(jnp.float32)

    # Layer 1: (TB, 128) @ (128, 128) on the MXU, bf16 operands, f32 accumulate.
    h1 = jnp.dot(x.astype(mm_dtype), w1_ref[...],
                 preferred_element_type=jnp.float32)
    h1 = jnp.maximum(h1 + b1_ref[...], 0.0)                  # f32 epilogue (Dropout = id)

    # Layer 2 (N padded 64 -> 128; padded columns stay exactly 0 after ReLU).
    h2 = jnp.dot(h1.astype(mm_dtype), w2_ref[...],
                 preferred_element_type=jnp.float32)
    h2 = jnp.maximum(h2 + b2_ref[...], 0.0)                  # f32 epilogue (Dropout = id)

    # Layer 3: only one real output column -> VPU multiply + lane reduce (XLU),
    # narrow (TB, 1) store instead of a 128x-wasted matmul + padded writeback.
    out = jnp.sum(h2 * w3_ref[...], axis=-1, keepdims=True) + b3_ref[...]
    out_ref[...] = out


# ----------------------------------------------------------------------------
# Parameter prep: fold embeddings into W1, zero-pad to lane-dense shapes.
# ----------------------------------------------------------------------------
def prepare_params(params, num_numerical, cat_dims, emb_dims,
                   matmul_dtype=jnp.bfloat16):
    num = num_numerical
    d_fold = num + sum(cat_dims)
    k_pad = _round_up(max(d_fold, 128), 128)

    w1 = params["w1"]                                 # (num + sum(emb_dims), 128)
    blocks = [w1[:num]]
    off = num
    for tbl, ed in zip(params["emb_tables"], emb_dims):
        # one_hot(cat) @ (E @ W1_e)  ==  gather(E, cat) @ W1_e
        blocks.append(tbl @ w1[off:off + ed])         # (cat_dim, 128)
        off += ed
    w1_fold = jnp.concatenate(blocks, axis=0)         # (d_fold, 128)
    w1_fold = jnp.pad(w1_fold, ((0, k_pad - d_fold), (0, 0)))

    h1 = w1.shape[1]                                  # 128
    h2 = params["w2"].shape[1]                        # 64
    h2_pad = _round_up(h2, 128)

    w2p = jnp.pad(params["w2"], ((0, 0), (0, h2_pad - h2)))
    b1 = params["b1"].reshape(1, h1).astype(jnp.float32)
    b2 = jnp.pad(params["b2"], (0, h2_pad - h2)).reshape(1, h2_pad).astype(jnp.float32)
    # W3 (64, 1): keep only its single column, zero-padded to h2_pad lanes (f32,
    # used on the VPU against the f32 h2).
    w3_row = jnp.pad(params["w3"][:, 0], (0, h2_pad - h2)).reshape(1, h2_pad)
    b3 = params["b3"].reshape(1, 1).astype(jnp.float32)

    cat_offsets, off = [], num
    for cd in cat_dims:
        cat_offsets.append(off)
        off += cd

    return dict(
        w1=w1_fold.astype(matmul_dtype), b1=b1,
        w2=w2p.astype(matmul_dtype), b2=b2,
        w3_row=w3_row.astype(jnp.float32), b3=b3,
        cat_offsets=tuple(cat_offsets), dout=1,
    )


# ----------------------------------------------------------------------------
# Forward wrapper: single fused pallas_call over narrow inputs.
# ----------------------------------------------------------------------------
def deep_car_price_forward(folded, x_num, x_cat, *, batch_tile=512):
    b, num = x_num.shape
    ncat = x_cat.shape[1]
    k_pad, h1 = folded["w1"].shape
    h2_pad = folded["w2"].shape[1]

    tb = min(batch_tile, _round_up(b, 8))
    b_pad = _round_up(b, tb)
    n_tiles = b_pad // tb

    # Narrow inputs only (no zero slab): numeric stays (B, num); categorical
    # indices get their folded column offsets pre-added; padded rows get -1 so
    # they never match the column iota.
    x_num_p = jnp.pad(x_num.astype(jnp.float32), ((0, b_pad - b), (0, 0)))
    offsets = jnp.asarray(folded["cat_offsets"], jnp.int32)[None, :]
    x_cat_p = jnp.pad(x_cat.astype(jnp.int32) + offsets,
                      ((0, b_pad - b), (0, 0)), constant_values=-1)

    kernel = functools.partial(_fused_kernel, k_pad=k_pad)
    args = (x_num_p, x_cat_p, folded["w1"], folded["b1"],
            folded["w2"], folded["b2"], folded["w3_row"], folded["b3"])
    out_shape = jax.ShapeDtypeStruct((b_pad, 1), jnp.float32)

    flops = 2 * b_pad * (k_pad * h1 + h1 * h2_pad) + 2 * b_pad * h2_pad
    bytes_accessed = int(
        x_num_p.size * 4 + x_cat_p.size * 4
        + folded["w1"].size * folded["w1"].dtype.itemsize
        + folded["w2"].size * folded["w2"].dtype.itemsize
        + (h1 + h2_pad + h2_pad + 1) * 4
        + b_pad * 4)
    cost = pl.CostEstimate(flops=flops, transcendentals=0,
                           bytes_accessed=bytes_accessed)

    if n_tiles == 1:
        # Tiny batch: no grid, no pipeline machinery; whole arrays in VMEM.
        out = pl.pallas_call(
            kernel,
            out_shape=out_shape,
            in_specs=[pl.BlockSpec(memory_space=pltpu.MemorySpace.VMEM)] * 8,
            out_specs=pl.BlockSpec(memory_space=pltpu.MemorySpace.VMEM),
            cost_estimate=cost,
        )(*args)
    else:
        # Batch-tiled: "parallel" grid axis (megacore sharding on v7x); weight
        # BlockSpecs return a constant block index so they stay VMEM-resident.
        out = pl.pallas_call(
            kernel,
            out_shape=out_shape,
            grid=(n_tiles,),
            in_specs=[
                pl.BlockSpec((tb, num), lambda i: (i, 0)),
                pl.BlockSpec((tb, ncat), lambda i: (i, 0)),
                pl.BlockSpec((k_pad, h1), lambda i: (0, 0)),
                pl.BlockSpec((1, h1), lambda i: (0, 0)),
                pl.BlockSpec((h1, h2_pad), lambda i: (0, 0)),
                pl.BlockSpec((1, h2_pad), lambda i: (0, 0)),
                pl.BlockSpec((1, h2_pad), lambda i: (0, 0)),
                pl.BlockSpec((1, 1), lambda i: (0, 0)),
            ],
            out_specs=pl.BlockSpec((tb, 1), lambda i: (i, 0)),
            compiler_params=pltpu.CompilerParams(
                dimension_semantics=("parallel",)),
            cost_estimate=cost,
        )(*args)

    return out[:b, :folded["dout"]]


# ----------------------------------------------------------------------------
# Parameter init + references
# ----------------------------------------------------------------------------
def init_params(key, num_numerical, cat_dims, emb_dims):
    keys = jax.random.split(key, 3 + len(cat_dims))
    emb_tables = [
        0.1 * jax.random.normal(keys[i], (cd, ed), dtype=jnp.float32)
        for i, (cd, ed) in enumerate(zip(cat_dims, emb_dims))
    ]
    d_in = num_numerical + sum(emb_dims)
    k = len(cat_dims)
    w1 = 0.1 * jax.random.normal(keys[k + 0], (d_in, 128), dtype=jnp.float32)
    b1 = jnp.zeros((128,), jnp.float32)
    w2 = 0.1 * jax.random.normal(keys[k + 1], (128, 64), dtype=jnp.float32)
    b2 = jnp.zeros((64,), jnp.float32)
    w3 = 0.1 * jax.random.normal(keys[k + 2], (64, 1), dtype=jnp.float32)
    b3 = jnp.zeros((1,), jnp.float32)
    return dict(emb_tables=emb_tables, w1=w1, b1=b1, w2=w2, b2=b2, w3=w3, b3=b3)


def reference_forward(params, x_num, x_cat):
    """Pure-JAX f32 reference mirroring the PyTorch module (eval mode)."""
    embs = [jnp.take(tbl, x_cat[:, i], axis=0)
            for i, tbl in enumerate(params["emb_tables"])]
    x = jnp.concatenate([x_num] + embs, axis=1)
    h1 = jnp.maximum(x @ params["w1"] + params["b1"], 0.0)
    h2 = jnp.maximum(h1 @ params["w2"] + params["b2"], 0.0)
    return h2 @ params["w3"] + params["b3"]


def reference_forward_mixed(folded, x_num, x_cat):
    """Pure-JAX reference with the SAME folded/padded bf16 math as the kernel."""
    b, num = x_num.shape
    k_pad = folded["w1"].shape[0]
    x = jnp.pad(x_num.astype(jnp.float32), ((0, 0), (0, k_pad - num)))
    col = jnp.arange(k_pad, dtype=jnp.int32)[None, :]
    for i, off in enumerate(folded["cat_offsets"]):
        x = x + (col == (x_cat[:, i:i + 1].astype(jnp.int32) + off)).astype(jnp.float32)
    mm = folded["w1"].dtype
    h1 = jnp.maximum(jnp.dot(x.astype(mm), folded["w1"],
                             preferred_element_type=jnp.float32) + folded["b1"], 0.0)
    h2 = jnp.maximum(jnp.dot(h1.astype(mm), folded["w2"],
                             preferred_element_type=jnp.float32) + folded["b2"], 0.0)
    out = jnp.sum(h2 * folded["w3_row"], axis=-1, keepdims=True) + folded["b3"]
    return out[:, :folded["dout"]]


if __name__ == "__main__":
    # Synthetic sizes (label_encoders unavailable): fuelType / brand / model.
    num_numerical = 5
    cat_dims = [4, 10, 20]
    emb_dims = [min(50, (d + 1) // 2) for d in cat_dims]      # -> [2, 5, 10]

    key = jax.random.PRNGKey(0)
    k_par, k_a, k_b, k_c, k_d, k_e, k_f = jax.random.split(key, 7)
    params = init_params(k_par, num_numerical, cat_dims, emb_dims)
    folded = prepare_params(params, num_numerical, cat_dims, emb_dims)

    def make_inputs(kn, kc, b):
        x_num = jax.random.normal(kn, (b, num_numerical), dtype=jnp.float32)
        ck = jax.random.split(kc, len(cat_dims))
        x_cat = jnp.stack(
            [jax.random.randint(ck[i], (b,), 0, cat_dims[i])
             for i in range(len(cat_dims))], axis=1).astype(jnp.int32)
        return x_num, x_cat

    def check(out, params, folded, x_num, x_cat):
        ref_mixed = reference_forward_mixed(folded, x_num, x_cat)
        ref_f32 = reference_forward(params, x_num, x_cat)
        assert out.shape == (x_num.shape[0], 1)
        assert jnp.allclose(out, ref_mixed, atol=1e-3, rtol=1e-3)
        assert jnp.allclose(out, ref_f32, atol=5e-2, rtol=5e-2)

    # 1) Small batch: single-tile (no-grid) path.
    x_num, x_cat = make_inputs(k_a, k_b, 8)
    out = jax.block_until_ready(deep_car_price_forward(folded, x_num, x_cat))
    check(out, params, folded, x_num, x_cat)

    # 2) Ragged batch, forced small tile: gridded path with row padding (3 tiles).
    x_num2, x_cat2 = make_inputs(k_c, k_d, 300)
    out2 = jax.block_until_ready(
        deep_car_price_forward(folded, x_num2, x_cat2, batch_tile=128))
    check(out2, params, folded, x_num2, x_cat2)

    # 3) Default 512-row tiles: gridded path, even tile count (v7x megacore).
    x_num3, x_cat3 = make_inputs(k_e, k_f, 1024)
    out3 = jax.block_until_ready(deep_car_price_forward(folded, x_num3, x_cat3))
    check(out3, params, folded, x_num3, x_cat3)

    print("KERNEL_OK")
</pallas_src>

<mosaic_0001>
module attributes {stable_mosaic.version = 11 : i64} {
  func.func @_fused_kernel(%arg0: memref<8x5xf32, #tpu.memory_space<vmem>>, %arg1: memref<8x3xi32, #tpu.memory_space<vmem>>, %arg2: memref<128x128xbf16, #tpu.memory_space<vmem>>, %arg3: memref<1x128xf32, #tpu.memory_space<vmem>>, %arg4: memref<128x128xbf16, #tpu.memory_space<vmem>>, %arg5: memref<1x128xf32, #tpu.memory_space<vmem>>, %arg6: memref<1x128xf32, #tpu.memory_space<vmem>>, %arg7: memref<1x1xf32, #tpu.memory_space<vmem>>, %arg8: memref<8x1xf32, #tpu.memory_space<vmem>>) attributes {dimension_semantics = [], scalar_prefetch = 0 : i64, scratch_operands = 0 : i64, tpu.core_type = #tpu.core_type<tc>} {
    %0 = tpu.iota {dimensions = array<i32: 1>} : vector<8x128xi32>
    %c0 = arith.constant 0 : index
    %c0_0 = arith.constant 0 : index
    %1 = vector.load %arg0[%c0, %c0_0] : memref<8x5xf32, #tpu.memory_space<vmem>>, vector<8x5xf32>
    %c0_i32 = arith.constant 0 : i32
    %2 = vector.broadcast %c0_i32 : i32 to vector<8x128xi32>
    %3 = arith.cmpi eq, %0, %2 : vector<8x128xi32>
    %4 = vector.extract_strided_slice %1 {offsets = [0, 0], sizes = [8, 1], strides = [1, 1]} : vector<8x5xf32> to vector<8x1xf32>
    %cst = arith.constant 0.000000e+00 : f32
    %5 = vector.shape_cast %4 : vector<8x1xf32> to vector<8x1xf32>
    %6 = vector.broadcast %5 : vector<8x1xf32> to vector<8x128xf32>
    %7 = vector.broadcast %cst : f32 to vector<8x128xf32>
    %8 = arith.select %3, %6, %7 : vector<8x128xi1>, vector<8x128xf32>
    %c1_i32 = arith.constant 1 : i32
    %9 = vector.broadcast %c1_i32 : i32 to vector<8x128xi32>
    %10 = arith.cmpi eq, %0, %9 : vector<8x128xi32>
    %11 = vector.extract_strided_slice %1 {offsets = [0, 1], sizes = [8, 1], strides = [1, 1]} : vector<8x5xf32> to vector<8x1xf32>
    %cst_1 = arith.constant 0.000000e+00 : f32
    %12 = vector.shape_cast %11 : vector<8x1xf32> to vector<8x1xf32>
    %13 = vector.broadcast %12 : vector<8x1xf32> to vector<8x128xf32>
    %14 = vector.broadcast %cst_1 : f32 to vector<8x128xf32>
    %15 = arith.select %10, %13, %14 : vector<8x128xi1>, vector<8x128xf32>
    %16 = arith.addf %8, %15 : vector<8x128xf32>
    %c2_i32 = arith.constant 2 : i32
    %17 = vector.broadcast %c2_i32 : i32 to vector<8x128xi32>
    %18 = arith.cmpi eq, %0, %17 : vector<8x128xi32>
    %19 = vector.extract_strided_slice %1 {offsets = [0, 2], sizes = [8, 1], strides = [1, 1]} : vector<8x5xf32> to vector<8x1xf32>
    %cst_2 = arith.constant 0.000000e+00 : f32
    %20 = vector.shape_cast %19 : vector<8x1xf32> to vector<8x1xf32>
    %21 = vector.broadcast %20 : vector<8x1xf32> to vector<8x128xf32>
    %22 = vector.broadcast %cst_2 : f32 to vector<8x128xf32>
    %23 = arith.select %18, %21, %22 : vector<8x128xi1>, vector<8x128xf32>
    %24 = arith.addf %16, %23 : vector<8x128xf32>
    %c3_i32 = arith.constant 3 : i32
    %25 = vector.broadcast %c3_i32 : i32 to vector<8x128xi32>
    %26 = arith.cmpi eq, %0, %25 : vector<8x128xi32>
    %27 = vector.extract_strided_slice %1 {offsets = [0, 3], sizes = [8, 1], strides = [1, 1]} : vector<8x5xf32> to vector<8x1xf32>
    %cst_3 = arith.constant 0.000000e+00 : f32
    %28 = vector.shape_cast %27 : vector<8x1xf32> to vector<8x1xf32>
    %29 = vector.broadcast %28 : vector<8x1xf32> to vector<8x128xf32>
    %30 = vector.broadcast %cst_3 : f32 to vector<8x128xf32>
    %31 = arith.select %26, %29, %30 : vector<8x128xi1>, vector<8x128xf32>
    %32 = arith.addf %24, %31 : vector<8x128xf32>
    %c4_i32 = arith.constant 4 : i32
    %33 = vector.broadcast %c4_i32 : i32 to vector<8x128xi32>
    %34 = arith.cmpi eq, %0, %33 : vector<8x128xi32>
    %35 = vector.extract_strided_slice %1 {offsets = [0, 4], sizes = [8, 1], strides = [1, 1]} : vector<8x5xf32> to vector<8x1xf32>
    %cst_4 = arith.constant 0.000000e+00 : f32
    %36 = vector.shape_cast %35 : vector<8x1xf32> to vector<8x1xf32>
    %37 = vector.broadcast %36 : vector<8x1xf32> to vector<8x128xf32>
    %38 = vector.broadcast %cst_4 : f32 to vector<8x128xf32>
    %39 = arith.select %34, %37, %38 : vector<8x128xi1>, vector<8x128xf32>
    %40 = arith.addf %32, %39 : vector<8x128xf32>
    %c0_5 = arith.constant 0 : index
    %c0_6 = arith.constant 0 : index
    %41 = vector.load %arg1[%c0_5, %c0_6] : memref<8x3xi32, #tpu.memory_space<vmem>>, vector<8x3xi32>
    %42 = vector.extract_strided_slice %41 {offsets = [0, 0], sizes = [8, 1], strides = [1, 1]} : vector<8x3xi32> to vector<8x1xi32>
    %43 = vector.broadcast %42 : vector<8x1xi32> to vector<8x128xi32>
    %44 = arith.cmpi eq, %0, %43 : vector<8x128xi32>
    %45 = arith.extui %44 : vector<8x128xi1> to vector<8x128xi32>
    %46 = arith.sitofp %45 : vector<8x128xi32> to vector<8x128xf32>
    %47 = arith.addf %40, %46 : vector<8x128xf32>
    %48 = vector.extract_strided_slice %41 {offsets = [0, 1], sizes = [8, 1], strides = [1, 1]} : vector<8x3xi32> to vector<8x1xi32>
    %49 = vector.broadcast %48 : vector<8x1xi32> to vector<8x128xi32>
    %50 = arith.cmpi eq, %0, %49 : vector<8x128xi32>
    %51 = arith.extui %50 : vector<8x128xi1> to vector<8x128xi32>
    %52 = arith.sitofp %51 : vector<8x128xi32> to vector<8x128xf32>
    %53 = arith.addf %47, %52 : vector<8x128xf32>
    %54 = vector.extract_strided_slice %41 {offsets = [0, 2], sizes = [8, 1], strides = [1, 1]} : vector<8x3xi32> to vector<8x1xi32>
    %55 = vector.broadcast %54 : vector<8x1xi32> to vector<8x128xi32>
    %56 = arith.cmpi eq, %0, %55 : vector<8x128xi32>
    %57 = arith.extui %56 : vector<8x128xi1> to vector<8x128xi32>
    %58 = arith.sitofp %57 : vector<8x128xi32> to vector<8x128xf32>
    %59 = arith.addf %53, %58 : vector<8x128xf32>
    %60 = arith.truncf %59 : vector<8x128xf32> to vector<8x128xbf16>
    %c0_7 = arith.constant 0 : index
    %c0_8 = arith.constant 0 : index
    %61 = vector.load %arg2[%c0_7, %c0_8] : memref<128x128xbf16, #tpu.memory_space<vmem>>, vector<128x128xbf16>
    %cst_9 = arith.constant dense<0.000000e+00> : vector<8x128xf32>
    %62 = tpu.matmul %60, %61, %cst_9 {dimension_numbers = #tpu.dot_dimension_numbers<[1], [0], [0], [1], [0, 0, 1, 1], [], []>} : vector<8x128xbf16>, vector<128x128xbf16>, vector<8x128xf32> -> vector<8x128xf32>
    %c0_10 = arith.constant 0 : index
    %c0_11 = arith.constant 0 : index
    %63 = vector.load %arg3[%c0_10, %c0_11] : memref<1x128xf32, #tpu.memory_space<vmem>>, vector<1x128xf32>
    %64 = vector.broadcast %63 : vector<1x128xf32> to vector<8x128xf32>
    %65 = arith.addf %62, %64 : vector<8x128xf32>
    %cst_12 = arith.constant 0.000000e+00 : f32
    %66 = vector.broadcast %cst_12 : f32 to vector<8x128xf32>
    %67 = arith.maximumf %65, %66 : vector<8x128xf32>
    %68 = arith.truncf %67 : vector<8x128xf32> to vector<8x128xbf16>
    %c0_13 = arith.constant 0 : index
    %c0_14 = arith.constant 0 : index
    %69 = vector.load %arg4[%c0_13, %c0_14] : memref<128x128xbf16, #tpu.memory_space<vmem>>, vector<128x128xbf16>
    %cst_15 = arith.constant dense<0.000000e+00> : vector<8x128xf32>
    %70 = tpu.matmul %68, %69, %cst_15 {dimension_numbers = #tpu.dot_dimension_numbers<[1], [0], [0], [1], [0, 0, 1, 1], [], []>} : vector<8x128xbf16>, vector<128x128xbf16>, vector<8x128xf32> -> vector<8x128xf32>
    %c0_16 = arith.constant 0 : index
    %c0_17 = arith.constant 0 : index
    %71 = vector.load %arg5[%c0_16, %c0_17] : memref<1x128xf32, #tpu.memory_space<vmem>>, vector<1x128xf32>
    %72 = vector.broadcast %71 : vector<1x128xf32> to vector<8x128xf32>
    %73 = arith.addf %70, %72 : vector<8x128xf32>
    %cst_18 = arith.constant 0.000000e+00 : f32
    %74 = vector.broadcast %cst_18 : f32 to vector<8x128xf32>
    %75 = arith.maximumf %73, %74 : vector<8x128xf32>
    %c0_19 = arith.constant 0 : index
    %c0_20 = arith.constant 0 : index
    %76 = vector.load %arg6[%c0_19, %c0_20] : memref<1x128xf32, #tpu.memory_space<vmem>>, vector<1x128xf32>
    %77 = vector.broadcast %76 : vector<1x128xf32> to vector<8x128xf32>
    %78 = arith.mulf %75, %77 : vector<8x128xf32>
    %cst_21 = arith.constant dense<0.000000e+00> : vector<8xf32>
    %79 = vector.multi_reduction <add>, %78, %cst_21 [1] : vector<8x128xf32> to vector<8xf32>
    %80 = vector.shape_cast %79 : vector<8xf32> to vector<8x1xf32>
    %c0_22 = arith.constant 0 : index
    %c0_23 = arith.constant 0 : index
    %81 = vector.load %arg7[%c0_22, %c0_23] : memref<1x1xf32, #tpu.memory_space<vmem>>, vector<1x1xf32>
    %82 = vector.broadcast %81 : vector<1x1xf32> to vector<8x1xf32>
    %83 = arith.addf %80, %82 : vector<8x1xf32>
    %c0_24 = arith.constant 0 : index
    %c0_25 = arith.constant 0 : index
    %84 = vector.load %arg8[%c0_24, %c0_25] : memref<8x1xf32, #tpu.memory_space<vmem>>, vector<8x1xf32>
    tpu.vector_store %arg8[%c0_24, %c0_25], %83 {strides = array<i32>} : memref<8x1xf32, #tpu.memory_space<vmem>>, vector<8x1xf32>,
    return
  }
}

</mosaic_0001>

<bundles_post_ra>
// kernel: tpu_custom_call.1
= control target key start
LH: loop header
LB: loop body
LE: loop exit
PB: predicated region body
PF: predicated region fallthrough
CT: control target
= control target key end

     0   :  { %s659_s0 = inlined_call_operand.vmem [shape: f32[8,5], index: 0, kind: input, shape index: {}]   ;;  %s660_s1 = inlined_call_operand.vmem [shape: s32[8,3], index: 1, kind: input, shape index: {}]   ;;  %s661_s2 = inlined_call_operand.hbm [shape: bf16[128,128], index: 2, kind: input, shape index: {}]   ;;  %s662_s3 = inlined_call_operand.vmem [shape: f32[1,128], index: 3, kind: input, shape index: {}]   ;;  %s663_s4 = inlined_call_operand.hbm [shape: bf16[128,128], index: 4, kind: input, shape index: {}]   ;;  %s664_s5 = inlined_call_operand.vmem [shape: f32[1,128], index: 5, kind: input, shape index: {}]   ;;  %s665_s6 = inlined_call_operand.vmem [shape: f32[1,128], index: 6, kind: input, shape index: {}]   ;;  %s666_s7 = inlined_call_operand.<no memory space> [shape: f32[1,1], index: 7, kind: input, shape index: {}]   ;;  %s667_s8 = inlined_call_operand.vmem [shape: f32[8,1], index: 8, kind: output, shape index: {}]  }
   0x1   :  { %v13_v0 = vstv %s666_s7 }
   0x2   :  { %14 = vst [vmem:[#allocation2] sm:$0x1] %v13_v0 }
   0x3   :  { %15 = vsyncpa [#allocation4], 0 }
   0x4   :  { %16 = vsyncpa [#allocation6], 0  ;;  %s537_s29 = smov [#allocation3]   ;;  %s489_s11 = scalar_lea.hbm %s661_s2, 1024 }
   0x5   :  { %s26_s30 = sshll.u32 %s537_s29, 4  ;;  %p490_p0 = scmp.ne.s32.totalorder %s661_s2, %s489_s11  ;;  %s27_s30 = int_to_ptr.vmem [resolvable:$true] %s26_s30 }
   0x6   :  { %p493_p1 = scmp.lt.u32.totalorder %s489_s11, %s661_s2 }
   0x8   :  { %p495_p2 = pnand %p493_p1, %p490_p0 }
   0xa   :  { %498 = shalt.err (!%p495_p2)
}
   0xb   :  { %s499_s7 = scalar_lea.vmem %s27_s30, 1024  ;;  %p504_p4 = scmp.lt.s32.totalorder %s27_s30, %s27_s30 }
   0xc   :  { %p500_p3 = scmp.ne.s32.totalorder %s27_s30, %s499_s7  ;;  %p505_p5 = scmp.lt.s32.totalorder %s499_s7, %s499_s7 }
   0xe   :  { %p506_p6 = por %p505_p5, %p504_p4 }
  0x10   :  { %p507_p7 = pnand %p506_p6, %p500_p3 }
  0x12   :  { %510 = shalt.err (!%p507_p7)
}
  0x13   :  { %s538_s16 = smov 64   ;;  %s539_s17 = smov 4  }
  0x14   :  { %32 = dma.hbm_to_vmem [thread:$0]  %s661_s2, 1024, %s27_s30, [#allocation4], %s538_s16, %s538_s16, %s539_s17  }
  0x15   :  { %s540_s20 = smov [#allocation5]   ;;  %s511_s24 = scalar_lea.hbm %s663_s4, 1024 }
  0x16   :  { %s40_s21 = sshll.u32 %s540_s20, 4  ;;  %p512_p8 = scmp.ne.s32.totalorder %s663_s4, %s511_s24  ;;  %s41_s21 = int_to_ptr.vmem [resolvable:$true] %s40_s21 }
  0x17   :  { %p515_p9 = scmp.lt.u32.totalorder %s511_s24, %s663_s4 }
  0x19   :  { %p517_p10 = pnand %p515_p9, %p512_p8 }
  0x1b   :  { %520 = shalt.err (!%p517_p10)
}
  0x1c   :  { %s521_s29 = scalar_lea.vmem %s41_s21, 1024  ;;  %p526_p12 = scmp.lt.s32.totalorder %s41_s21, %s41_s21 }
  0x1d   :  { %p522_p11 = scmp.ne.s32.totalorder %s41_s21, %s521_s29  ;;  %p527_p13 = scmp.lt.s32.totalorder %s521_s29, %s521_s29 }
  0x1f   :  { %p528_p0 = por %p527_p13, %p526_p12 }
  0x21   :  { %p529_p1 = pnand %p528_p0, %p522_p11 }
  0x23   :  { %532 = shalt.err (!%p529_p1)
}
  0x24   :  { %46 = dma.hbm_to_vmem [thread:$0]  %s663_s4, 1024, %s41_s21, [#allocation6], %s538_s16, %s538_s16, %s539_s17  }
  0x25   :  { %533 = dma.done.wait [#allocation4], 1024  }
  0x26   :  { %534 = vsyncadd [#allocation4], 4294966272 }
  0x27   :  { %535 = dma.done.wait [#allocation6], 1024  }
  0x28   :  { %536 = vsyncadd [#allocation6], 4294966272  ;;  %v541_v1 = vmov 2   ;;  %v542_v2 = vmov 0   ;;  %v543_v3 = vmov 0.0   ;;  %v62_v4 = vld [vmem:[%s659_s0] sm:$0xff]  ;;  %v60_v23 = vlaneseq }
  0x29   :  { %466 = vset.pattern.permute.xlu1 %v541_v1  ;;  %464 = vset.pattern.permute.xlu0 %v542_v2  ;;  %v473_v5 = vld [vmem:[#allocation3] sm:$0xff]   ;;  %v474_v6 = vld [vmem:[#allocation3 + $0x8] sm:$0xff]   ;;  %v544_v7 = vmov 3   ;;  %v545_v8 = vmov 1   ;;  %v475_v10 = vld [vmem:[#allocation3 + $0x10] sm:$0xff]   ;;  %v546_v11 = vmov 4  }
  0x2a   :  { %413 = vmatprep.subr.bf16.mxu0 %v543_v3  ;;  %433 = vmatprep.subr.bf16.mxu1 %v543_v3  ;;  %v98_v9 = vld [vmem:[%s660_s1] sm:$0xff]  ;;  %v478_v14 = vld [vmem:[#allocation3 + $0x28] sm:$0xff]   ;;  %v479_v15 = vld [vmem:[#allocation3 + $0x30] sm:$0xff]   ;;  %vm547_vm0 = vmmov 0   ;;  %v61_v24 = vand.u32 127, %v60_v23  ;;  %vm364_vm9 = vcmask 7168  }
  0x2b   :  { %79 = vperm.xlu1 %466, %v62_v4   ;;  %66 = vperm.xlu0 %464, %v62_v4   ;;  %v476_v12 = vld [vmem:[#allocation3 + $0x18] sm:$0xff]   ;;  %v477_v13 = vld [vmem:[#allocation3 + $0x20] sm:$0xff]   ;;  %v482_v18 = vld [vmem:[#allocation5 + $0x8] sm:$0xff]  }
  0x2c   :  { %414 = vmatpush3.bf16.msra.mxu0 %v473_v5  ;;  %429 = vmatprep.mubr.msk.bf16.mxu0 %vm547_vm0, %v543_v3  ;;  %v481_v16 = vld [vmem:[#allocation5] sm:$0xff]   ;;  %v480_v17 = vld [vmem:[#allocation3 + $0x38] sm:$0xff]   ;;  %v483_v19 = vld [vmem:[#allocation5 + $0x10] sm:$0xff]   ;;  %vm63_vm1 = vcmp.eq.s32.totalorder %v61_v24, 0  ;;  %vm70_vm2 = vcmp.eq.s32.totalorder %v61_v24, 1  ;;  %vm77_vm3 = vcmp.eq.s32.totalorder %v61_v24, 2 }
  0x2d   :  { %415 = vmatprep.subr.bf16.mxu0 %v543_v3  ;;  %449 = vmatprep.mubr.msk.bf16.mxu1 %vm547_vm0, %v543_v3  ;;  %v484_v20 = vld [vmem:[#allocation5 + $0x18] sm:$0xff]   ;;  %v485_v21 = vld [vmem:[#allocation5 + $0x20] sm:$0xff]   ;;  %v486_v22 = vld [vmem:[#allocation5 + $0x28] sm:$0xff]   ;;  %vm84_vm4 = vcmp.eq.s32.totalorder %v61_v24, 3  ;;  %vm91_vm5 = vcmp.eq.s32.totalorder %v61_v24, 4 }
  0x2e   :  { %434 = vmatpush3.bf16.msra.mxu1 %v481_v16  ;;  %v487_v49 = vld [vmem:[#allocation5 + $0x30] sm:$0xff]   ;;  %v488_v50 = vld [vmem:[#allocation5 + $0x38] sm:$0xff]  }
  0x2f   :  { %467 = vset.pattern.permute.xlu1 %v544_v7  ;;  %465 = vset.pattern.permute.xlu0 %v545_v8  ;;  %v375_v51 = vld [vmem:[%s662_s3] ss:$0 sm:$0xff] }
  0x30   :  { %86 = vperm.xlu1 %467, %v62_v4   ;;  %72 = vperm.xlu0 %465, %v62_v4   ;;  %v384_v59 = vld [vmem:[%s664_s5] ss:$0 sm:$0xff] }
  0x31   :  { %416 = vmatpush3.bf16.msra.mxu0 %v474_v6  ;;  %435 = vmatprep.subr.bf16.mxu1 %v543_v3  ;;  %v393_v0 = vld [vmem:[%s665_s6] ss:$0 sm:$0xff] }
  0x32   :  { %417 = vmatprep.subr.bf16.mxu0 %v543_v3  ;;  %436 = vmatpush3.bf16.msra.mxu1 %v482_v18 }
  0x33   :  { %437 = vmatprep.subr.bf16.mxu1 %v543_v3 }
  0x34   :  { %468 = vset.pattern.permute.xlu1 %v546_v11  ;;  %469 = vset.pattern.permute.xlu0 %v542_v2 }
  0x35   :  { %93 = vperm.xlu1 %468, %v62_v4   ;;  %100 = vperm.xlu0 %469, %v98_v9   ;;  %v394_v4 = vld [vmem:[#allocation2] ss:$0 sm:$0xff] }
  0x36   :  { %418 = vmatpush3.bf16.msra.mxu0 %v475_v10  ;;  %438 = vmatpush3.bf16.msra.mxu1 %v483_v19 }
  0x37   :  { %419 = vmatprep.subr.bf16.mxu0 %v543_v3  ;;  %439 = vmatprep.subr.bf16.mxu1 %v543_v3 }
  0x39   :  { %470 = vset.pattern.permute.xlu1 %v545_v8  ;;  %472 = vset.pattern.permute.xlu0 %v541_v1 }
  0x3a   :  { %107 = vperm.xlu1 %470, %v98_v9   ;;  %420 = vmatpush3.bf16.msra.mxu0 %v476_v12 }
  0x3b   :  { %421 = vmatprep.subr.bf16.mxu0 %v543_v3  ;;  %440 = vmatpush3.bf16.msra.mxu1 %v484_v20 }
  0x3c   :  { %441 = vmatprep.subr.bf16.mxu1 %v543_v3 }
  0x3e   :  { %471 = vset.pattern.permute.xlu1 %v541_v1  ;;  %422 = vmatpush3.bf16.msra.mxu0 %v477_v13 }
  0x3f   :  { %114 = vperm.xlu1 %471, %v98_v9   ;;  %423 = vmatprep.subr.bf16.mxu0 %v543_v3 }
  0x40   :  { %442 = vmatpush3.bf16.msra.mxu1 %v485_v21 }
  0x41   :  { %443 = vmatprep.subr.bf16.mxu1 %v543_v3 }
  0x42   :  { %424 = vmatpush3.bf16.msra.mxu0 %v478_v14 }
  0x43   :  { %425 = vmatprep.subr.bf16.mxu0 %v543_v3 }
  0x44   :  { %444 = vmatpush3.bf16.msra.mxu1 %v486_v22 }
  0x45   :  { %445 = vmatprep.subr.bf16.mxu1 %v543_v3 }
  0x46   :  { %426 = vmatpush3.bf16.msra.mxu0 %v479_v15 }
  0x47   :  { %427 = vmatprep.subr.bf16.mxu0 %v543_v3 }
  0x48   :  { %446 = vmatpush3.bf16.msra.mxu1 %v487_v49 }
  0x49   :  { %447 = vmatprep.subr.bf16.mxu1 %v543_v3 }
  0x4a   :  { %428 = vmatpush3.bf16.msra.mxu0 %v480_v17 }
  0x4c   :  { %448 = vmatpush3.bf16.msra.mxu1 %v488_v50 }
  0xaa   :  { %v80_v25 = vpop.permute.xlu1 %79  ;;  %v67_v26 = vpop.permute.xlu0 %66 }
  0xab   :  { %v69_v27 = vsel %vm63_vm1, %v67_v26, 0.0  ;;  %v82_v32 = vsel %vm77_vm3, %v80_v25, 0.0 }
  0xaf   :  { %v87_v28 = vpop.permute.xlu1 %86  ;;  %v73_v29 = vpop.permute.xlu0 %72 }
  0xb0   :  { %v75_v30 = vsel %vm70_vm2, %v73_v29, 0.0  ;;  %v89_v34 = vsel %vm84_vm4, %v87_v28, 0.0 }
  0xb1   :  { %v76_v31 = vadd.f32 %v75_v30, %v69_v27 }
  0xb3   :  { %v83_v33 = vadd.f32 %v82_v32, %v76_v31 }
  0xb4   :  { %v94_v35 = vpop.permute.xlu1 %93  ;;  %v101_v36 = vpop.permute.xlu0 %100 }
  0xb5   :  { %v90_v37 = vadd.f32 %v89_v34, %v83_v33  ;;  %v96_v38 = vsel %vm91_vm5, %v94_v35, 0.0  ;;  %vm102_vm6 = vcmp.eq.s32.totalorder %v61_v24, %v101_v36 }
  0xb6   :  { %v372_v40 = vsel %vm102_vm6, 1.0, %v543_v3 }
  0xb7   :  { %v97_v39 = vadd.f32 %v96_v38, %v90_v37 }
  0xb9   :  { %v108_v41 = vpop.permute.xlu1 %107  ;;  %v105_v42 = vadd.f32 %v372_v40, %v97_v39 }
  0xba   :  { %vm109_vm7 = vcmp.eq.s32.totalorder %v61_v24, %v108_v41 }
  0xbb   :  { %v373_v43 = vsel %vm109_vm7, 1.0, %v543_v3 }
  0xbc   :  { %v112_v45 = vadd.f32 %v373_v43, %v105_v42 }
  0xbe   :  { %v115_v44 = vpop.permute.xlu1 %114 }
  0xbf   :  { %vm116_vm8 = vcmp.eq.s32.totalorder %v61_v24, %v115_v44 }
  0xc0   :  { %v374_v46 = vsel %vm116_vm8, 1.0, %v543_v3 }
  0xc1   :  { %v119_v47 = vadd.f32 %v374_v46, %v112_v45 }
  0xc3   :  { %v120_v48 = vpack.c.bf16 %v119_v47, %v119_v47 }
  0xc5   :  { %430 = vmatmul.mubr.bf16.vlgmr.msra.gmra.mrb[0].mxu0 %v120_v48 }
 0x198   :  { %v226_v52 = vpop.f32.mrb[0].mxu0 }
 0x199   :  { %v227_v53 = vadd.f32 %v375_v51, %v226_v52  ;;  %v431_v54 = vpop.f32.mrb[1].mxu0 }
 0x19a   :  { %v229_v55 = vpop.f32.mrb[2].mxu0 }
 0x19b   :  { %v232_v56 = vmax.f32 %v227_v53, 0.0  ;;  %v432_v57 = vpop.f32.mrb[3].mxu0 }
 0x19d   :  { %v233_v58 = vpack.c.bf16 %v232_v56, %v232_v56 }
 0x19f   :  { %450 = vmatmul.mubr.bf16.vlgmr.msra.gmra.mrb[0].mxu1 %v233_v58 }
 0x272   :  { %v339_v60 = vpop.f32.mrb[0].mxu1 }
 0x273   :  { %v340_v61 = vadd.f32 %v384_v59, %v339_v60  ;;  %v451_v62 = vpop.f32.mrb[1].mxu1 }
 0x274   :  { %v342_v63 = vpop.f32.mrb[2].mxu1 }
 0x275   :  { %v345_v1 = vmax.f32 %v340_v61, 0.0  ;;  %v452_v2 = vpop.f32.mrb[3].mxu1 }
 0x277   :  { %v353_v3 = vmul.f32 %v393_v0, %v345_v1 }
 0x279   :  { %354 = vadd.xlane.f32.xlu0 %v353_v3 }
 0x306   :  { %v355_v5 = vpop.xlane.xlu0 %354 }
 0x307   :  { %v363_v6 = vadd.f32 %v394_v4, %v355_v5 }
 0x309   :  { %365 = vst.msk [vmem:[%s667_s8] sm:$0xff] %vm364_vm9, %v363_v6 }
 0x30a   :  { %370 = vsyncpa [#allocation4], 1 }
 0x30b   :  { %371 = vsyncpa [#allocation6], 1 }

</bundles_post_ra>
